<compile_context>
chip_gen: v7x
topology: tpu7x:2x2x1
jax: 0.10.0
libtpu: 0.0.40
codegen_flags: <defaults>
</compile_context>

<pallas_src>
import functools

import jax
import jax.numpy as jnp
from jax.experimental import pallas as pl
from jax.experimental.pallas import tpu as pltpu

LANES = 128


def _dice_kernel(n_ref, pred_ref, true_ref, out_ref, acc_tp_ref, acc_s_ref,
                 *, smooth, block_rows):
    i = pl.program_id(0)

    @pl.when(i == 0)
    def _():
        acc_tp_ref[...] = jnp.zeros_like(acc_tp_ref)
        acc_s_ref[...] = jnp.zeros_like(acc_s_ref)

    # In-kernel tail mask: global flat element index < true element count.
    block_elems = block_rows * LANES
    base = i * block_elems
    row_ids = jax.lax.broadcasted_iota(jnp.int32, (block_rows, LANES), 0)
    lane_ids = jax.lax.broadcasted_iota(jnp.int32, (block_rows, LANES), 1)
    idx = base + row_ids * LANES + lane_ids
    mask = idx < n_ref[0]

    p = jax.nn.sigmoid(pred_ref[...].astype(jnp.float32))
    t = true_ref[...].astype(jnp.float32)
    p = jnp.where(mask, p, 0.0)
    t = jnp.where(mask, t, 0.0)

    # Pure elementwise (VPU) accumulation; no per-step cross-lane reductions.
    acc_tp_ref[...] += t * p          # -> intersection
    acc_s_ref[...] += t + p           # -> sum(true) + sum(pred)

    @pl.when(i == pl.num_programs(0) - 1)
    def _():
        inter = jnp.sum(acc_tp_ref[...])
        denom = jnp.sum(acc_s_ref[...])
        out_ref[0] = -((2.0 * inter + smooth) / (denom + smooth))


def dice_loss(y_pred, y_true, smooth=1.0, block_rows=1024):
    """Equivalent to DiceLoss(smooth).forward(y_pred, y_true)."""
    n = int(y_pred.size)
    assert int(y_true.size) == n

    rows = max(pl.cdiv(n, LANES), 1)
    # Clamp tile height to the data (keep it a multiple of 8 for (8,128) tiling).
    block_rows = max(8, min(int(block_rows), pl.cdiv(rows, 8) * 8))
    rows_pad = pl.cdiv(rows, block_rows) * block_rows
    total = rows_pad * LANES

    # Keep original dtypes through the DMA; cast to f32 inside the kernel.
    pred_flat = y_pred.reshape(-1)
    true_flat = y_true.reshape(-1)
    if total != n:
        # Only pad when not tile-divisible; kernel masks the tail so pad
        # values are irrelevant (zeros are fine).
        pred_flat = jnp.pad(pred_flat, (0, total - n))
        true_flat = jnp.pad(true_flat, (0, total - n))

    pred2d = pred_flat.reshape(rows_pad, LANES)
    true2d = true_flat.reshape(rows_pad, LANES)
    n_arr = jnp.array([n], dtype=jnp.int32)

    grid = (rows_pad // block_rows,)

    out = pl.pallas_call(
        functools.partial(_dice_kernel, smooth=float(smooth),
                          block_rows=block_rows),
        out_shape=jax.ShapeDtypeStruct((1,), jnp.float32),
        grid_spec=pltpu.PrefetchScalarGridSpec(
            num_scalar_prefetch=1,
            grid=grid,
            in_specs=[
                pl.BlockSpec((block_rows, LANES), lambda i, n_ref: (i, 0)),
                pl.BlockSpec((block_rows, LANES), lambda i, n_ref: (i, 0)),
            ],
            out_specs=pl.BlockSpec(memory_space=pltpu.SMEM),
            scratch_shapes=[
                pltpu.VMEM((block_rows, LANES), jnp.float32),
                pltpu.VMEM((block_rows, LANES), jnp.float32),
            ],
        ),
        compiler_params=pltpu.CompilerParams(
            dimension_semantics=("arbitrary",),  # sequential accumulation
        ),
    )(n_arr, pred2d, true2d)
    return out[0]


def dice_loss_ref(y_pred, y_true, smooth=1.0):
    p = jax.nn.sigmoid(y_pred.astype(jnp.float32)).reshape(-1)
    t = y_true.astype(jnp.float32).reshape(-1)
    inter = jnp.sum(t * p)
    return -((2.0 * inter + smooth) / (jnp.sum(t) + jnp.sum(p) + smooth))


if __name__ == "__main__":
    key = jax.random.PRNGKey(0)
    k1, k2, k3, k4 = jax.random.split(key, 4)

    # Small NCHW-shaped logits/targets, consistent with a segmentation setup.
    y_pred = jax.random.normal(k1, (2, 4, 16, 16), dtype=jnp.float32)
    y_true = (jax.random.uniform(k2, (2, 4, 16, 16)) > 0.5).astype(jnp.float32)

    loss = jax.block_until_ready(dice_loss(y_pred, y_true, smooth=1.0))
    ref = jax.block_until_ready(dice_loss_ref(y_pred, y_true, smooth=1.0))
    assert jnp.allclose(loss, ref, rtol=1e-5, atol=1e-5), (loss, ref)

    # Non-lane-divisible shape exercises the in-kernel tail-mask path.
    y_pred2 = jax.random.normal(k3, (1, 3, 7, 11), dtype=jnp.float32)
    y_true2 = (jax.random.uniform(k4, (1, 3, 7, 11)) > 0.5).astype(jnp.float32)

    loss2 = jax.block_until_ready(dice_loss(y_pred2, y_true2, smooth=1.0))
    ref2 = jax.block_until_ready(dice_loss_ref(y_pred2, y_true2, smooth=1.0))
    assert jnp.allclose(loss2, ref2, rtol=1e-5, atol=1e-5), (loss2, ref2)

    print("KERNEL_OK")
</pallas_src>

<mosaic_0001>
module attributes {stable_mosaic.version = 11 : i64} {
  func.func @_dice_kernel(%arg0: i32, %arg1: memref<1xi32, #tpu.memory_space<smem>>, %arg2: memref<16x128xf32, #tpu.memory_space<vmem>>, %arg3: memref<16x128xf32, #tpu.memory_space<vmem>>, %arg4: memref<1xf32, #tpu.memory_space<smem>>, %arg5: memref<16x128xf32, #tpu.memory_space<vmem>>, %arg6: memref<16x128xf32, #tpu.memory_space<vmem>>) attributes {dimension_semantics = [#tpu.dimension_semantics<arbitrary>], iteration_bounds = array<i64: 1>, scalar_prefetch = 1 : i64, scratch_operands = 2 : i64, tpu.core_type = #tpu.core_type<tc>, window_params = [{transform_indices = @transform_0, window_bounds = array<i64: 16, 128>}, {transform_indices = @transform_1, window_bounds = array<i64: 16, 128>}, {transform_indices = @transform_2, window_bounds = array<i64: 1>}]} {
    %c0_i32 = arith.constant 0 : i32
    %0 = arith.cmpi eq, %arg0, %c0_i32 : i32
    %1 = arith.extui %0 : i1 to i32
    %c0_i32_0 = arith.constant 0 : i32
    %2 = arith.cmpi ne, %1, %c0_i32_0 : i32
    scf.if %2 {
      %cst_17 = arith.constant 0.000000e+00 : f32
      %36 = vector.broadcast %cst_17 : f32 to vector<16x128xf32>
      %c0_18 = arith.constant 0 : index
      %c0_19 = arith.constant 0 : index
      %37 = vector.load %arg5[%c0_18, %c0_19] : memref<16x128xf32, #tpu.memory_space<vmem>>, vector<16x128xf32>
      tpu.vector_store %arg5[%c0_18, %c0_19], %36 {strides = array<i32>} : memref<16x128xf32, #tpu.memory_space<vmem>>, vector<16x128xf32>,
      %cst_20 = arith.constant 0.000000e+00 : f32
      %38 = vector.broadcast %cst_20 : f32 to vector<16x128xf32>
      %c0_21 = arith.constant 0 : index
      %c0_22 = arith.constant 0 : index
      %39 = vector.load %arg6[%c0_21, %c0_22] : memref<16x128xf32, #tpu.memory_space<vmem>>, vector<16x128xf32>
      tpu.vector_store %arg6[%c0_21, %c0_22], %38 {strides = array<i32>} : memref<16x128xf32, #tpu.memory_space<vmem>>, vector<16x128xf32>,
    } else {
    }
    %c2048_i32 = arith.constant 2048 : i32
    %3 = arith.muli %arg0, %c2048_i32 : i32
    %4 = tpu.iota {dimensions = array<i32: 0>} : vector<16x128xi32>
    %5 = tpu.iota {dimensions = array<i32: 1>} : vector<16x128xi32>
    %c128_i32 = arith.constant 128 : i32
    %6 = vector.broadcast %c128_i32 : i32 to vector<16x128xi32>
    %7 = arith.muli %4, %6 : vector<16x128xi32>
    %8 = vector.broadcast %3 : i32 to vector<16x128xi32>
    %9 = arith.addi %8, %7 : vector<16x128xi32>
    %10 = arith.addi %9, %5 : vector<16x128xi32>
    %c0 = arith.constant 0 : index
    %11 = memref.load %arg1[%c0] : memref<1xi32, #tpu.memory_space<smem>>
    %12 = vector.broadcast %11 : i32 to vector<16x128xi32>
    %13 = arith.cmpi slt, %10, %12 : vector<16x128xi32>
    %c0_1 = arith.constant 0 : index
    %c0_2 = arith.constant 0 : index
    %14 = vector.load %arg2[%c0_1, %c0_2] : memref<16x128xf32, #tpu.memory_space<vmem>>, vector<16x128xf32>
    %15 = arith.negf %14 : vector<16x128xf32>
    %16 = math.exp %15 : vector<16x128xf32>
    %cst = arith.constant 1.000000e+00 : f32
    %17 = vector.broadcast %cst : f32 to vector<16x128xf32>
    %18 = arith.addf %17, %16 : vector<16x128xf32>
    %19 = arith.divf %17, %18 : vector<16x128xf32>
    %c0_3 = arith.constant 0 : index
    %c0_4 = arith.constant 0 : index
    %20 = vector.load %arg3[%c0_3, %c0_4] : memref<16x128xf32, #tpu.memory_space<vmem>>, vector<16x128xf32>
    %cst_5 = arith.constant 0.000000e+00 : f32
    %21 = vector.broadcast %cst_5 : f32 to vector<16x128xf32>
    %22 = arith.select %13, %19, %21 : vector<16x128xi1>, vector<16x128xf32>
    %cst_6 = arith.constant 0.000000e+00 : f32
    %23 = vector.broadcast %cst_6 : f32 to vector<16x128xf32>
    %24 = arith.select %13, %20, %23 : vector<16x128xi1>, vector<16x128xf32>
    %c0_7 = arith.constant 0 : index
    %c0_8 = arith.constant 0 : index
    %25 = vector.load %arg5[%c0_7, %c0_8] : memref<16x128xf32, #tpu.memory_space<vmem>>, vector<16x128xf32>
    %26 = arith.mulf %24, %22 : vector<16x128xf32>
    %27 = arith.addf %25, %26 : vector<16x128xf32>
    %c0_9 = arith.constant 0 : index
    %c0_10 = arith.constant 0 : index
    %28 = vector.load %arg5[%c0_9, %c0_10] : memref<16x128xf32, #tpu.memory_space<vmem>>, vector<16x128xf32>
    tpu.vector_store %arg5[%c0_9, %c0_10], %27 {strides = array<i32>} : memref<16x128xf32, #tpu.memory_space<vmem>>, vector<16x128xf32>,
    %c0_11 = arith.constant 0 : index
    %c0_12 = arith.constant 0 : index
    %29 = vector.load %arg6[%c0_11, %c0_12] : memref<16x128xf32, #tpu.memory_space<vmem>>, vector<16x128xf32>
    %30 = arith.addf %24, %22 : vector<16x128xf32>
    %31 = arith.addf %29, %30 : vector<16x128xf32>
    %c0_13 = arith.constant 0 : index
    %c0_14 = arith.constant 0 : index
    %32 = vector.load %arg6[%c0_13, %c0_14] : memref<16x128xf32, #tpu.memory_space<vmem>>, vector<16x128xf32>
    tpu.vector_store %arg6[%c0_13, %c0_14], %31 {strides = array<i32>} : memref<16x128xf32, #tpu.memory_space<vmem>>, vector<16x128xf32>,
    %c0_i32_15 = arith.constant 0 : i32
    %33 = arith.cmpi eq, %arg0, %c0_i32_15 : i32
    %34 = arith.extui %33 : i1 to i32
    %c0_i32_16 = arith.constant 0 : i32
    %35 = arith.cmpi ne, %34, %c0_i32_16 : i32
    scf.if %35 {
      %c0_17 = arith.constant 0 : index
      %c0_18 = arith.constant 0 : index
      %36 = vector.load %arg5[%c0_17, %c0_18] : memref<16x128xf32, #tpu.memory_space<vmem>>, vector<16x128xf32>
      %37 = vector.shape_cast %36 : vector<16x128xf32> to vector<1x16x128xf32>
      %cst_19 = arith.constant dense<0.000000e+00> : vector<1xf32>
      %38 = vector.multi_reduction <add>, %37, %cst_19 [1, 2] : vector<1x16x128xf32> to vector<1xf32>
      %39 = vector.shape_cast %38 : vector<1xf32> to vector<1x1x1xf32>
      %40 = vector.extract %39[0, 0, 0] : f32 from vector<1x1x1xf32>
      %c0_20 = arith.constant 0 : index
      %c0_21 = arith.constant 0 : index
      %41 = vector.load %arg6[%c0_20, %c0_21] : memref<16x128xf32, #tpu.memory_space<vmem>>, vector<16x128xf32>
      %42 = vector.shape_cast %41 : vector<16x128xf32> to vector<1x16x128xf32>
      %cst_22 = arith.constant dense<0.000000e+00> : vector<1xf32>
      %43 = vector.multi_reduction <add>, %42, %cst_22 [1, 2] : vector<1x16x128xf32> to vector<1xf32>
      %44 = vector.shape_cast %43 : vector<1xf32> to vector<1x1x1xf32>
      %45 = vector.extract %44[0, 0, 0] : f32 from vector<1x1x1xf32>
      %cst_23 = arith.constant 2.000000e+00 : f32
      %46 = arith.mulf %cst_23, %40 : f32
      %cst_24 = arith.constant 1.000000e+00 : f32
      %47 = arith.addf %46, %cst_24 : f32
      %cst_25 = arith.constant 1.000000e+00 : f32
      %48 = arith.addf %45, %cst_25 : f32
      %49 = arith.divf %47, %48 : f32
      %cst_26 = arith.constant 0.000000e+00 : f32
      %50 = arith.subf %cst_26, %49 : f32
      %c0_27 = arith.constant 0 : index
      %51 = memref.load %arg4[%c0_27] : memref<1xf32, #tpu.memory_space<smem>>
      memref.store %50, %arg4[%c0_27] : memref<1xf32, #tpu.memory_space<smem>>
    } else {
    }
    return
  }
  func.func @transform_0(%arg0: i32, %arg1: memref<1xi32, #tpu.memory_space<smem>>) -> (i32, i32) {
    %c0_i32 = arith.constant 0 : i32
    %c0_i32_0 = arith.constant 0 : i32
    return %arg0, %c0_i32 : i32, i32
  }
  func.func @transform_1(%arg0: i32, %arg1: memref<1xi32, #tpu.memory_space<smem>>) -> (i32, i32) {
    %c0_i32 = arith.constant 0 : i32
    %c0_i32_0 = arith.constant 0 : i32
    return %arg0, %c0_i32 : i32, i32
  }
  func.func @transform_2(%arg0: i32, %arg1: memref<1xi32, #tpu.memory_space<smem>>) -> i32 {
    %c0_i32 = arith.constant 0 : i32
    %c0_i32_0 = arith.constant 0 : i32
    return %c0_i32 : i32
  }
}

</mosaic_0001>

<bundles_post_ra>
// kernel: tpu_custom_call.1
= control target key start
LH: loop header
LB: loop body
LE: loop exit
PB: predicated region body
PF: predicated region fallthrough
CT: control target
= control target key end

     0   :  { %9 = vsyncpa [#allocation7], 0  ;;  %s302_s0 = inlined_call_operand.<no memory space> [shape: s32[1], index: 0, kind: input, shape index: {}]   ;;  %s303_s1 = inlined_call_operand.hbm [shape: f32[16,128], index: 1, kind: input, shape index: {}]   ;;  %s304_s2 = inlined_call_operand.hbm [shape: f32[16,128], index: 2, kind: input, shape index: {}]   ;;  %s305_s3 = inlined_call_operand.hbm [shape: f32[1], index: 3, kind: output, shape index: {}]  }
   0x1   :  { %10 = vsyncpa [#allocation10], 0 }
   0x2   :  { %11 = vsyncpa [#allocation8], 0  ;;  %s238_s12 = smov [#allocation6]   ;;  %s178_s16 = scalar_lea.hbm %s303_s1, 256 }
   0x3   :  { %s17_s13 = sshll.u32 %s238_s12, 4  ;;  %p179_p0 = scmp.ne.s32.totalorder %s303_s1, %s178_s16  ;;  %s18_s13 = int_to_ptr.vmem [resolvable:$true] %s17_s13 }
   0x4   :  { %p182_p1 = scmp.lt.u32.totalorder %s178_s16, %s303_s1 }
   0x6   :  { %p184_p2 = pnand %p182_p1, %p179_p0 }
   0x8   :  { %187 = shalt.err (!%p184_p2)
}
   0x9   :  { %s188_s21 = scalar_lea.vmem %s18_s13, 256  ;;  %p193_p4 = scmp.lt.s32.totalorder %s18_s13, %s18_s13 }
   0xa   :  { %p189_p3 = scmp.ne.s32.totalorder %s18_s13, %s188_s21  ;;  %p194_p5 = scmp.lt.s32.totalorder %s188_s21, %s188_s21 }
   0xc   :  { %p195_p6 = por %p194_p5, %p193_p4 }
   0xe   :  { %p196_p7 = pnand %p195_p6, %p189_p3 }
  0x10   :  { %199 = shalt.err (!%p196_p7)
}
  0x11   :  { %s239_s22 = smov 128   ;;  %s240_s23 = smov 8  }
  0x12   :  { %23 = dma.hbm_to_vmem [thread:$0]  %s303_s1, 256, %s18_s13, [#allocation7], %s239_s22, %s239_s22, %s240_s23  }
  0x13   :  { %s241_s26 = smov [#allocation9]   ;;  %s200_s30 = scalar_lea.hbm %s304_s2, 256 }
  0x14   :  { %s29_s27 = sshll.u32 %s241_s26, 4  ;;  %p201_p8 = scmp.ne.s32.totalorder %s304_s2, %s200_s30  ;;  %s30_s27 = int_to_ptr.vmem [resolvable:$true] %s29_s27 }
  0x15   :  { %p204_p9 = scmp.lt.u32.totalorder %s200_s30, %s304_s2 }
  0x17   :  { %p206_p10 = pnand %p204_p9, %p201_p8 }
  0x19   :  { %209 = shalt.err (!%p206_p10)
}
  0x1a   :  { %s210_s8 = scalar_lea.vmem %s30_s27, 256  ;;  %p215_p12 = scmp.lt.s32.totalorder %s30_s27, %s30_s27 }
  0x1b   :  { %p211_p11 = scmp.ne.s32.totalorder %s30_s27, %s210_s8  ;;  %p216_p13 = scmp.lt.s32.totalorder %s210_s8, %s210_s8 }
  0x1d   :  { %p217_p0 = por %p216_p13, %p215_p12 }
  0x1f   :  { %p218_p1 = pnand %p217_p0, %p211_p11 }
  0x21   :  { %221 = shalt.err (!%p218_p1)
}
  0x22   :  { %35 = dma.hbm_to_vmem [thread:$0]  %s304_s2, 256, %s30_s27, [#allocation10], %s239_s22, %s239_s22, %s240_s23  }
  0x23   :  { %232 = dma.done.wait [#allocation7], 256  }
  0x24   :  { %233 = vsyncadd [#allocation7], 4294967040 }
  0x25   :  { %234 = dma.done.wait [#allocation10], 256  }
  0x26   :  { %235 = vsyncadd [#allocation10], 4294967040  ;;  %v67_v0 = vld [vmem:[#allocation6] sm:$0xff]  ;;  %v68_v1 = vld [vmem:[#allocation6 + $0x8] sm:$0xff]  ;;  %v51_v4 = vlaneseq  ;;  %v64_v16 = vstv %s302_s0  ;;  %s222_s20 = scalar_lea.hbm %s305_s3, 16 }
  0x27   :  { %v155_v2 = vmul.f32 -1.442695, %v67_v0  ;;  %v156_v3 = vmul.f32 -1.442695, %v68_v1  ;;  %v81_v17 = vld [vmem:[#allocation9] sm:$0xff]  ;;  %v82_v18 = vld [vmem:[#allocation9 + $0x8] sm:$0xff]  ;;  %p223_p2 = scmp.ne.s32.totalorder %s305_s3, %s222_s20  ;;  %p226_p3 = scmp.lt.u32.totalorder %s222_s20, %s305_s3 }
  0x28   :  { %v52_v5 = vshrl.u32 %v51_v4, 7  ;;  %v55_v9 = vand.u32 127, %v51_v4 }
  0x29   :  { %168 = vpow2.f32 %v155_v2  ;;  %p228_p4 = pnand %p226_p3, %p223_p2 }
  0x2a   :  { %170 = vpow2.f32 %v156_v3  ;;  %v53_v6 = vadd.s32 8, %v52_v5  ;;  %v56_v10 = vmul.u32 128, %v52_v5 }
  0x2c   :  { %v57_v12 = vmul.u32 128, %v53_v6  ;;  %v61_v14 = vadd.s32 %v56_v10, %v55_v9 }
  0x2e   :  { %v62_v15 = vadd.s32 %v57_v12, %v55_v9  ;;  %vm65_vm0 = vcmp.lt.s32.totalorder %v61_v14, %v64_v16 }
  0x2f   :  { %v85_v19 = vsel %vm65_vm0, %v81_v17, 0.0 }
  0x30   :  { %vm66_vm1 = vcmp.lt.s32.totalorder %v62_v15, %v64_v16 }
  0x31   :  { %v86_v21 = vsel %vm66_vm1, %v82_v18, 0.0 }
  0x33   :  { %v169_v7 = vpop.eup %168 }
  0x34   :  { %v171_v8 = vpop.eup %170  ;;  %v75_v11 = vadd.f32 1.0, %v169_v7 }
  0x35   :  { %v76_v13 = vadd.f32 1.0, %v171_v8 }
  0x36   :  { %172 = vrcp.f32 %v75_v11 }
  0x37   :  { %174 = vrcp.f32 %v76_v13 }
  0x40   :  { %v173_v20 = vpop.eup %172 }
  0x41   :  { %v175_v22 = vpop.eup %174  ;;  %v83_v23 = vsel %vm65_vm0, %v173_v20, 0.0 }
  0x42   :  { %v84_v24 = vsel %vm66_vm1, %v175_v22, 0.0  ;;  %v89_v25 = vmul.f32 %v85_v19, %v83_v23  ;;  %v97_v27 = vadd.f32 %v85_v19, %v83_v23 }
  0x43   :  { %v90_v26 = vmul.f32 %v86_v21, %v84_v24  ;;  %v98_v28 = vadd.f32 %v86_v21, %v84_v24 }
  0x45   :  { %v108_v29 = vadd.f32 %v90_v26, %v89_v25  ;;  %v120_v30 = vadd.f32 %v98_v28, %v97_v27 }
  0x47   :  { %109 = vadd.xlane.f32.xlu0 %v108_v29 }
  0x4b   :  { %121 = vadd.xlane.f32.xlu0 %v120_v30 }
  0xd4   :  { %v110_v31 = vpop.xlane.xlu0 %109 }
  0xd5   :  { %v111_v32 = vrot.slane %v110_v31, 4 }
  0xd7   :  { %v112_v33 = vadd.f32 %v111_v32, %v110_v31 }
  0xd8   :  { %v122_v34 = vpop.xlane.xlu0 %121 }
  0xd9   :  { %v113_v35 = vrot.slane %v112_v33, 2  ;;  %v123_v36 = vrot.slane %v122_v34, 4 }
  0xdb   :  { %v124_v37 = vadd.f32 %v123_v36, %v122_v34  ;;  %v114_v38 = vadd.f32 %v113_v35, %v112_v33 }
  0xdd   :  { %v125_v39 = vrot.slane %v124_v37, 2  ;;  %v115_v40 = vrot.slane %v114_v38, 1 }
  0xdf   :  { %v126_v41 = vadd.f32 %v125_v39, %v124_v37  ;;  %v116_v42 = vadd.f32 %v115_v40, %v114_v38 }
  0xe1   :  { %157 = vpush %v116_v42  ;;  %v127_v43 = vrot.slane %v126_v41, 1 }
  0xe3   :  { %v128_v44 = vadd.f32 %v127_v43, %v126_v41 }
  0xe5   :  { %159 = vpush %v128_v44 }
 0x112   :  { %s158_s0 = spop %157 }
 0x113   :  { %s130_s13 = smul.f32 2.0, %s158_s0 }
 0x115   :  { %s131_s14 = sadd.f32 1.0, %s130_s13 }
 0x116   :  { %s160_s11 = spop %159 }
 0x117   :  { %s132_s12 = sadd.f32 1.0, %s160_s11 }
 0x119   :  { %v133_v45 = vstv %s132_s12 }
 0x11a   :  { %176 = vrcp.f32 %v133_v45 }
 0x124   :  { %v177_v46 = vpop.eup %176 }
 0x125   :  { %161 = vpush %v177_v46 }
 0x156   :  { %s162_s15 = spop %161 }
 0x157   :  { %s136_s16 = smul.f32 %s162_s15, %s131_s14 }
 0x159   :  { %s137_s17 = ssub.f32 0.0, %s136_s16 }
 0x15b   :  { %139 = sst [smem:[#allocation11]] %s137_s17 }
 0x15c   :  { %231 = shalt.err (!%p228_p4)
}
 0x15d   :  { %s242_s25 = smov [#allocation11]  }
 0x15e   :  { %147 = dma.smem_to_hbm %s242_s25, 16, %s305_s3, [#allocation8]  }
 0x15f   :  { %236 = dma.done.wait [#allocation8], 16  }
 0x160   :  { %237 = vsyncadd [#allocation8], 4294967280 }
 0x161   :  { %151 = sfence }
 0x162   :  { %152 = vsyncpa [#allocation7], 1 }
 0x163   :  { %153 = vsyncpa [#allocation10], 1 }
 0x164   :  { %154 = vsyncpa [#allocation8], 1 }

</bundles_post_ra>
